<compile_context>
chip_gen: v7x
topology: tpu7x:2x2x1
jax: 0.10.0
libtpu: 0.0.40
codegen_flags: <defaults>
</compile_context>

<pallas_src>
import jax
import jax.numpy as jnp
from jax.experimental import pallas as pl
from jax.experimental.pallas import tpu as pltpu


def _attention_kernel(x_ref, o_ref):
    # Elementwise hot path on the whole VMEM tile: sigmoid(relu(x)).
    # ReLU -> VPU max; sigmoid -> EUP exp + VPU.  Kernel is mem-bound, so this
    # compute is entirely hidden under the HBM stream.
    x = x_ref[...]
    r = jnp.maximum(x, jnp.zeros_like(x))
    o_ref[...] = jax.nn.sigmoid(r).astype(o_ref.dtype)


def attention_forward(x, *, lane=512, max_block_rows=1024):
    """sigmoid(relu(x)) for an arbitrary-shape input, via a Pallas TPU kernel.

    Layout strategy (elementwise op => shape-agnostic):
      * flatten to 1D, pad to a multiple of (block_rows * lane)
      * view as (padded_rows, lane) with lane a large multiple of 128
      * tile with fixed (block_rows, lane) blocks; block_rows capped at
        max_block_rows (=> <= ~2 MiB f32 per block, double-buffered in+out
        stays well under the 16 MiB v5e scoped-VMEM default and far under
        v6e/v7x budgets)
    """
    orig_shape = x.shape
    dtype = x.dtype
    total = x.size

    # Rows of the lane-dense slab.
    rows = pl.cdiv(total, lane)
    # Fixed block: multiple of 8 sublanes, capped at max_block_rows.
    block_rows = min(max_block_rows, ((rows + 7) // 8) * 8)
    # Pad rows up to a multiple of the block so the grid divides evenly.
    padded_rows = ((rows + block_rows - 1) // block_rows) * block_rows
    padded_total = padded_rows * lane

    x_flat = x.reshape(-1)
    if padded_total != total:
        x_flat = jnp.pad(x_flat, (0, padded_total - total))
    x2d = x_flat.reshape(padded_rows, lane)

    grid = (padded_rows // block_rows,)

    out2d = pl.pallas_call(
        _attention_kernel,
        out_shape=jax.ShapeDtypeStruct((padded_rows, lane), dtype),
        grid_spec=pl.GridSpec(
            grid=grid,
            in_specs=[pl.BlockSpec((block_rows, lane), lambda i: (i, 0))],
            out_specs=pl.BlockSpec((block_rows, lane), lambda i: (i, 0)),
        ),
        compiler_params=pltpu.CompilerParams(
            # Single streaming axis; "parallel" lets v7x shard grid steps
            # across its 2 TensorCores, neutral on v5e/v6e.
            dimension_semantics=("parallel",),
        ),
    )(x2d)

    out_flat = out2d.reshape(-1)[:total]
    return out_flat.reshape(orig_shape)


if __name__ == "__main__":
    key = jax.random.PRNGKey(0)
    # Small NCHW input consistent with a conv-style feature map.
    x = jax.random.normal(key, (2, 4, 16, 16), dtype=jnp.float32)

    out = attention_forward(x)
    out = jax.block_until_ready(out)

    # Reference check in plain JAX.
    ref = jax.nn.sigmoid(jnp.maximum(x, 0.0))
    assert out.shape == x.shape
    assert jnp.allclose(out, ref, atol=1e-6), "mismatch vs reference"

    print("KERNEL_OK")
</pallas_src>

<mosaic_0001>
module attributes {stable_mosaic.version = 11 : i64} {
  func.func @_attention_kernel(%arg0: i32, %arg1: memref<8x512xf32, #tpu.memory_space<vmem>>, %arg2: memref<8x512xf32, #tpu.memory_space<vmem>>) attributes {dimension_semantics = [#tpu.dimension_semantics<parallel>], iteration_bounds = array<i64: 1>, scalar_prefetch = 0 : i64, scratch_operands = 0 : i64, tpu.core_type = #tpu.core_type<tc>, window_params = [{transform_indices = @transform_0, window_bounds = array<i64: 8, 512>}, {transform_indices = @transform_1, window_bounds = array<i64: 8, 512>}]} {
    %c0 = arith.constant 0 : index
    %c0_0 = arith.constant 0 : index
    %0 = vector.load %arg1[%c0, %c0_0] : memref<8x512xf32, #tpu.memory_space<vmem>>, vector<8x512xf32>
    %cst = arith.constant 0.000000e+00 : f32
    %1 = vector.broadcast %cst : f32 to vector<8x512xf32>
    %2 = arith.maximumf %0, %1 : vector<8x512xf32>
    %3 = arith.negf %2 : vector<8x512xf32>
    %4 = math.exp %3 : vector<8x512xf32>
    %cst_1 = arith.constant 1.000000e+00 : f32
    %5 = vector.broadcast %cst_1 : f32 to vector<8x512xf32>
    %6 = arith.addf %5, %4 : vector<8x512xf32>
    %7 = arith.divf %5, %6 : vector<8x512xf32>
    %c0_2 = arith.constant 0 : index
    %c0_3 = arith.constant 0 : index
    %8 = vector.load %arg2[%c0_2, %c0_3] : memref<8x512xf32, #tpu.memory_space<vmem>>, vector<8x512xf32>
    tpu.vector_store %arg2[%c0_2, %c0_3], %7 {strides = array<i32>} : memref<8x512xf32, #tpu.memory_space<vmem>>, vector<8x512xf32>,
    return
  }
  func.func @transform_0(%arg0: i32) -> (i32, i32) {
    %c0_i32 = arith.constant 0 : i32
    %c0_i32_0 = arith.constant 0 : i32
    return %arg0, %c0_i32 : i32, i32
  }
  func.func @transform_1(%arg0: i32) -> (i32, i32) {
    %c0_i32 = arith.constant 0 : i32
    %c0_i32_0 = arith.constant 0 : i32
    return %arg0, %c0_i32 : i32, i32
  }
}

</mosaic_0001>

<bundles_post_ra>
// kernel: tpu_custom_call.1
= control target key start
LH: loop header
LB: loop body
LE: loop exit
PB: predicated region body
PF: predicated region fallthrough
CT: control target
= control target key end

     0   :  { %6 = vsyncpa [#allocation3], 0  ;;  %s178_s0 = inlined_call_operand.hbm [shape: f32[8,512], index: 0, kind: input, shape index: {}]   ;;  %s179_s1 = inlined_call_operand.hbm [shape: f32[8,512], index: 1, kind: output, shape index: {}]  }
   0x1   :  { %7 = vsyncpa [#allocation4], 0  ;;  %s142_s6 = smov [#allocation2]   ;;  %s94_s10 = scalar_lea.hbm %s178_s0, 512 }
   0x2   :  { %s14_s7 = sshll.u32 %s142_s6, 4  ;;  %p95_p0 = scmp.ne.s32.totalorder %s178_s0, %s94_s10  ;;  %s15_s7 = int_to_ptr.vmem [resolvable:$true] %s14_s7 }
   0x3   :  { %p98_p1 = scmp.lt.u32.totalorder %s94_s10, %s178_s0 }
   0x5   :  { %p100_p2 = pnand %p98_p1, %p95_p0 }
   0x7   :  { %103 = shalt.err (!%p100_p2)
}
   0x8   :  { %s104_s15 = scalar_lea.vmem %s15_s7, 512  ;;  %p109_p4 = scmp.lt.s32.totalorder %s15_s7, %s15_s7 }
   0x9   :  { %p105_p3 = scmp.ne.s32.totalorder %s15_s7, %s104_s15  ;;  %p110_p5 = scmp.lt.s32.totalorder %s104_s15, %s104_s15 }
   0xb   :  { %p111_p6 = por %p110_p5, %p109_p4 }
   0xd   :  { %p112_p7 = pnand %p111_p6, %p105_p3 }
   0xf   :  { %115 = shalt.err (!%p112_p7)
}
  0x10   :  { %17 = dma.hbm_to_vmem [thread:$0]  %s178_s0, 512, %s15_s7, [#allocation3]  }
  0x11   :  { %138 = dma.done.wait [#allocation3], 512  }
  0x12   :  { %139 = vsyncadd [#allocation3], 4294966784  ;;  %v21_v0 = vld [vmem:[#allocation2] sm:$0xff]  ;;  %v22_v1 = vld [vmem:[#allocation2 + $0x8] sm:$0xff]  ;;  %s143_s0 = smov [#allocation5]  }
  0x13   :  { %v23_v2 = vld [vmem:[#allocation2 + $0x10] sm:$0xff]  ;;  %v25_v3 = vmax.f32 %v21_v0, 0.0  ;;  %v26_v4 = vmax.f32 %v22_v1, 0.0  ;;  %v24_v6 = vld [vmem:[#allocation2 + $0x18] sm:$0xff]  ;;  %s63_s18 = sshll.u32 %s143_s0, 4  ;;  %s64_s18 = int_to_ptr.vmem [resolvable:$true] %s63_s18 }
  0x14   :  { %v27_v5 = vmax.f32 %v23_v2, 0.0  ;;  %v28_v7 = vmax.f32 %v24_v6, 0.0  ;;  %s116_s19 = scalar_lea.vmem %s64_s18, 512  ;;  %p121_p9 = scmp.lt.s32.totalorder %s64_s18, %s64_s18 }
  0x15   :  { %v72_v8 = vmul.f32 -1.442695, %v25_v3  ;;  %v73_v9 = vmul.f32 -1.442695, %v26_v4  ;;  %p117_p8 = scmp.ne.s32.totalorder %s64_s18, %s116_s19  ;;  %p122_p10 = scmp.lt.s32.totalorder %s116_s19, %s116_s19 }
  0x16   :  { %v74_v10 = vmul.f32 -1.442695, %v27_v5  ;;  %v75_v11 = vmul.f32 -1.442695, %v28_v7 }
  0x17   :  { %78 = vpow2.f32 %v72_v8  ;;  %p123_p11 = por %p122_p10, %p121_p9 }
  0x18   :  { %80 = vpow2.f32 %v73_v9 }
  0x19   :  { %82 = vpow2.f32 %v74_v10  ;;  %p124_p12 = pnand %p123_p11, %p117_p8 }
  0x1a   :  { %84 = vpow2.f32 %v75_v11 }
  0x21   :  { %v79_v12 = vpop.eup %78 }
  0x22   :  { %v81_v13 = vpop.eup %80  ;;  %v41_v14 = vadd.f32 1.0, %v79_v12 }
  0x23   :  { %v83_v15 = vpop.eup %82  ;;  %v42_v16 = vadd.f32 1.0, %v81_v13 }
  0x24   :  { %v85_v17 = vpop.eup %84  ;;  %86 = vrcp.f32 %v41_v14  ;;  %v43_v18 = vadd.f32 1.0, %v83_v15 }
  0x25   :  { %88 = vrcp.f32 %v42_v16  ;;  %v44_v19 = vadd.f32 1.0, %v85_v17 }
  0x26   :  { %90 = vrcp.f32 %v43_v18 }
  0x27   :  { %92 = vrcp.f32 %v44_v19 }
  0x2e   :  { %v87_v20 = vpop.eup %86 }
  0x2f   :  { %v89_v21 = vpop.eup %88  ;;  %53 = vst [vmem:[#allocation5] sm:$0xff] %v87_v20 }
  0x30   :  { %v91_v22 = vpop.eup %90  ;;  %54 = vst [vmem:[#allocation5 + $0x8] sm:$0xff] %v89_v21 }
  0x31   :  { %v93_v23 = vpop.eup %92  ;;  %55 = vst [vmem:[#allocation5 + $0x10] sm:$0xff] %v91_v22 }
  0x32   :  { %56 = vst [vmem:[#allocation5 + $0x18] sm:$0xff] %v93_v23 }
  0x33   :  { %127 = shalt.err (!%p124_p12)
}
  0x34   :  { %s128_s22 = scalar_lea.hbm %s179_s1, 512 }
  0x35   :  { %p129_p13 = scmp.ne.s32.totalorder %s179_s1, %s128_s22  ;;  %p132_p0 = scmp.lt.u32.totalorder %s128_s22, %s179_s1 }
  0x37   :  { %p134_p1 = pnand %p132_p0, %p129_p13 }
  0x39   :  { %137 = shalt.err (!%p134_p1)
}
  0x3a   :  { %66 = dma.vmem_to_hbm [thread:$0]  %s64_s18, 512, %s179_s1, [#allocation4]  }
  0x3b   :  { %140 = dma.done.wait [#allocation4], 512  }
  0x3c   :  { %141 = vsyncadd [#allocation4], 4294966784 }
  0x3d   :  { %70 = vsyncpa [#allocation3], 1 }
  0x3e   :  { %71 = vsyncpa [#allocation4], 1 }

</bundles_post_ra>
